<compile_context>
chip_gen: v7x
topology: tpu7x:2x2x1
jax: 0.10.0
libtpu: 0.0.40
codegen_flags: <defaults>
</compile_context>

<pallas_src>
import functools

import jax
import jax.numpy as jnp
from jax.experimental import pallas as pl
from jax.experimental.pallas import tpu as pltpu


def gcn1_batched_kernel(med_ref, a_ref, x_ref, w_ref, b_ref, o_ref):
    """Fused forward for a block of GB graphs.

    Per graph g:
        A'      = where(A < median_g, 0, A)
        A_norm  = softmax(A', axis=-1)
        [h1|h2] = X @ [W1|W2] + [b1|b2]          (single fused MXU matmul)
        y       = leaky_relu(0.1 * h2 + 0.9 * (A_norm @ h1))
    The GB per-graph (N, out_dim) results are packed lane-dense into one
    (N, GB*out_dim) output slab.
    """
    GB = a_ref.shape[0]
    out_dim = o_ref.shape[-1] // GB
    base = pl.program_id(0) * GB

    # Hoisted, block-invariant loads / casts (bf16 operands feed the MXU,
    # accumulation stays f32).
    w_bf = w_ref[...].astype(jnp.bfloat16)          # (in_dim, 2*out_dim)
    bias = b_ref[...]                               # (1, 2*out_dim), f32
    x_bf = x_ref[...].astype(jnp.bfloat16)          # (GB, N, in_dim)

    ys = []
    for g in range(GB):                             # small static unroll
        med = med_ref[base + g]                     # SMEM scalar (prefetched)

        # --- threshold + row-wise softmax on the adjacency (f32) ---
        A = a_ref[g]                                # (N, N)
        A = jnp.where(A < med, 0.0, A)
        A = A - jnp.max(A, axis=-1, keepdims=True)
        e = jnp.exp(A)
        inv = pl.reciprocal(jnp.sum(e, axis=-1, keepdims=True), approx=True)
        A_norm = (e * inv).astype(jnp.bfloat16)

        # --- fused linear: one matmul for both heads, then slice ---
        H = jnp.dot(x_bf[g], w_bf, preferred_element_type=jnp.float32) + bias
        h1 = H[:, :out_dim]
        h2 = H[:, out_dim:]

        # --- graph aggregation + mix + leaky_relu (slope 0.01) ---
        agg = jnp.dot(A_norm, h1.astype(jnp.bfloat16),
                      preferred_element_type=jnp.float32)
        y = 0.1 * h2 + 0.9 * agg
        ys.append(jnp.where(y >= 0, y, 0.01 * y))

    # Lane-dense (N, GB*out_dim) store: unmasked vst when GB*out_dim % 128 == 0.
    o_ref[...] = jnp.concatenate(ys, axis=-1)


def lower_median_nonzero_triu(A):
    """torch.median semantics: LOWER median of nonzero strictly-upper-tri elems.

    Only the N*(N-1)/2 upper-triangular values are gathered and sorted (not the
    full N^2 matrix)."""
    N = A.shape[-1]
    iu, ju = jnp.triu_indices(N, k=1)               # static indices
    vals = A[iu, ju]                                # (M,)
    nz = vals != 0.0
    k = jnp.sum(nz.astype(jnp.int32))
    s = jnp.sort(jnp.where(nz, vals, jnp.inf))      # nonzeros first, ascending
    idx = jnp.maximum((k - 1) // 2, 0)              # lower-median index
    return s[idx]


def gcn1_forward_batched(A, X, W1, b1, W2, b2, *, graphs_per_block=4):
    """Batched forward over B graphs; returns (B, N, out_dim)."""
    B, N, _ = A.shape
    in_dim = X.shape[-1]
    out_dim = W1.shape[1]
    GB = graphs_per_block
    assert B % GB == 0, "batch must be divisible by graphs_per_block"

    # Data-dependent median per graph (dynamic nonzero count) stays in JAX glue.
    meds = jax.vmap(lower_median_nonzero_triu)(A).astype(jnp.float32)   # (B,)

    # Fuse the two linear layers: one weight / one bias, sliced in-kernel.
    Wcat = jnp.concatenate([W1, W2], axis=1).astype(jnp.float32)        # (in, 2*out)
    bcat = jnp.concatenate([b1, b2]).reshape(1, -1).astype(jnp.float32)

    slab = pl.pallas_call(
        gcn1_batched_kernel,
        out_shape=jax.ShapeDtypeStruct((N, B * out_dim), jnp.float32),
        grid_spec=pltpu.PrefetchScalarGridSpec(
            num_scalar_prefetch=1,                  # medians -> SMEM scalars
            grid=(B // GB,),
            in_specs=[
                pl.BlockSpec((GB, N, N), lambda i, med: (i, 0, 0)),       # A
                pl.BlockSpec((GB, N, in_dim), lambda i, med: (i, 0, 0)),  # X
                pl.BlockSpec((in_dim, 2 * out_dim), lambda i, med: (0, 0)),  # Wcat
                pl.BlockSpec((1, 2 * out_dim), lambda i, med: (0, 0)),       # bcat
            ],
            out_specs=pl.BlockSpec((N, GB * out_dim), lambda i, med: (0, i)),
        ),
        compiler_params=pltpu.CompilerParams(
            dimension_semantics=("parallel",)),     # shard batch blocks (2 TCs on v7x)
    )(meds, A, X, Wcat, bcat)

    # Un-pack the lane-dense slab: (N, B*out_dim) -> (B, N, out_dim).
    return jnp.transpose(slab.reshape(N, B, out_dim), (1, 0, 2))


if __name__ == "__main__":
    key = jax.random.PRNGKey(0)
    B, N, in_dim, out_dim = 8, 8, 16, 32
    kA, kX, kW1, kb1, kW2, kb2 = jax.random.split(key, 6)

    # Deterministic synthetic inputs / parameters.
    A = jax.random.uniform(kA, (B, N, N), dtype=jnp.float32)
    A = 0.5 * (A + jnp.swapaxes(A, -1, -2))          # symmetric-ish adjacencies
    X = jax.random.normal(kX, (B, N, in_dim), dtype=jnp.float32)
    W1 = 0.1 * jax.random.normal(kW1, (in_dim, out_dim), dtype=jnp.float32)  # fc
    b1 = 0.1 * jax.random.normal(kb1, (out_dim,), dtype=jnp.float32)
    W2 = 0.1 * jax.random.normal(kW2, (in_dim, out_dim), dtype=jnp.float32)  # fc2
    b2 = 0.1 * jax.random.normal(kb2, (out_dim,), dtype=jnp.float32)

    fwd = jax.jit(gcn1_forward_batched)
    out = jax.block_until_ready(fwd(A, X, W1, b1, W2, b2))

    # Pure-JAX (f32) reference for a sanity check.
    def ref_one(Ag, Xg):
        med = lower_median_nonzero_triu(Ag)
        A2 = jnp.where(Ag < med, 0.0, Ag)
        A_norm = jax.nn.softmax(A2, axis=-1)
        y = 0.1 * (Xg @ W2 + b2) + 0.9 * (A_norm @ (Xg @ W1 + b1))
        return jnp.where(y >= 0, y, 0.01 * y)

    ref = jax.vmap(ref_one)(A, X)

    assert out.shape == (B, N, out_dim)
    assert jnp.allclose(out, ref, rtol=2e-2, atol=2e-2), "mismatch vs reference"

    print("KERNEL_OK")
</pallas_src>

<mosaic_0001>
module attributes {stable_mosaic.version = 11 : i64} {
  func.func private @main(%arg0: i32) attributes {dimension_semantics = [#tpu.dimension_semantics<core_parallel>], iteration_bounds = array<i64: 2>, tpu.core_type = #tpu.core_type<sc_scalar_subcore>, window_params = []} {
    return
  }
}

module attributes {stable_mosaic.version = 11 : i64} {
  func.func private @main(%arg0: i32) attributes {dimension_semantics = [#tpu.dimension_semantics<core_parallel>], iteration_bounds = array<i64: 2>, tpu.core_type = #tpu.core_type<sc_scalar_subcore>, window_params = []} {
    return
  }
}

module attributes {stable_mosaic.version = 11 : i64} {
  func.func @gcn1_batched_kernel(%arg0: i32, %arg1: memref<8xf32, #tpu.memory_space<smem>>, %arg2: memref<4x8x8xf32, #tpu.memory_space<vmem>>, %arg3: memref<4x8x16xf32, #tpu.memory_space<vmem>>, %arg4: memref<16x64xf32, #tpu.memory_space<vmem>>, %arg5: memref<1x64xf32, #tpu.memory_space<vmem>>, %arg6: memref<8x128xf32, #tpu.memory_space<vmem>>) attributes {dimension_semantics = [#tpu.dimension_semantics<parallel>], iteration_bounds = array<i64: 2>, scalar_prefetch = 1 : i64, scratch_operands = 0 : i64, tpu.core_type = #tpu.core_type<tc>, window_params = [{transform_indices = @transform_0, window_bounds = array<i64: 4, 8, 8>}, {transform_indices = @transform_1, window_bounds = array<i64: 4, 8, 16>}, {pipeline_mode = #tpu.pipeline_mode<synchronous>, transform_indices = @transform_2, window_bounds = array<i64: 16, 64>}, {pipeline_mode = #tpu.pipeline_mode<synchronous>, transform_indices = @transform_3, window_bounds = array<i64: 1, 64>}, {transform_indices = @transform_4, window_bounds = array<i64: 8, 128>}]} {
    %c4_i32 = arith.constant 4 : i32
    %0 = arith.muli %arg0, %c4_i32 : i32
    %c0 = arith.constant 0 : index
    %c0_0 = arith.constant 0 : index
    %1 = vector.load %arg4[%c0, %c0_0] : memref<16x64xf32, #tpu.memory_space<vmem>>, vector<16x64xf32>
    %2 = arith.truncf %1 : vector<16x64xf32> to vector<16x64xbf16>
    %c0_1 = arith.constant 0 : index
    %c0_2 = arith.constant 0 : index
    %3 = vector.load %arg5[%c0_1, %c0_2] : memref<1x64xf32, #tpu.memory_space<vmem>>, vector<1x64xf32>
    %c0_3 = arith.constant 0 : index
    %c0_4 = arith.constant 0 : index
    %c0_5 = arith.constant 0 : index
    %4 = vector.load %arg3[%c0_3, %c0_4, %c0_5] : memref<4x8x16xf32, #tpu.memory_space<vmem>>, vector<4x8x16xf32>
    %5 = arith.truncf %4 : vector<4x8x16xf32> to vector<4x8x16xbf16>
    %c0_i32 = arith.constant 0 : i32
    %6 = arith.addi %0, %c0_i32 : i32
    %7 = arith.index_cast %6 : i32 to index
    %8 = memref.load %arg1[%7] : memref<8xf32, #tpu.memory_space<smem>>
    %c0_6 = arith.constant 0 : index
    %c0_7 = arith.constant 0 : index
    %c0_8 = arith.constant 0 : index
    %9 = vector.load %arg2[%c0_6, %c0_7, %c0_8] : memref<4x8x8xf32, #tpu.memory_space<vmem>>, vector<1x8x8xf32>
    %10 = vector.shape_cast %9 : vector<1x8x8xf32> to vector<8x8xf32>
    %11 = vector.broadcast %8 : f32 to vector<8x8xf32>
    %12 = arith.cmpf olt, %10, %11 : vector<8x8xf32>
    %cst = arith.constant 0.000000e+00 : f32
    %13 = vector.broadcast %cst : f32 to vector<8x8xf32>
    %14 = arith.select %12, %13, %10 : vector<8x8xi1>, vector<8x8xf32>
    %cst_9 = arith.constant dense<0xFF800000> : vector<8xf32>
    %15 = vector.multi_reduction <maximumf>, %14, %cst_9 [1] : vector<8x8xf32> to vector<8xf32>
    %16 = vector.shape_cast %15 : vector<8xf32> to vector<8x1xf32>
    %17 = vector.broadcast %16 : vector<8x1xf32> to vector<8x8xf32>
    %18 = arith.subf %14, %17 : vector<8x8xf32>
    %19 = math.exp %18 : vector<8x8xf32>
    %cst_10 = arith.constant dense<0.000000e+00> : vector<8xf32>
    %20 = vector.multi_reduction <add>, %19, %cst_10 [1] : vector<8x8xf32> to vector<8xf32>
    %21 = vector.shape_cast %20 : vector<8xf32> to vector<8x1xf32>
    %22 = tpu.reciprocal %21 {approx = true} : vector<8x1xf32> -> vector<8x1xf32>
    %23 = vector.broadcast %22 : vector<8x1xf32> to vector<8x8xf32>
    %24 = arith.mulf %19, %23 : vector<8x8xf32>
    %25 = arith.truncf %24 : vector<8x8xf32> to vector<8x8xbf16>
    %26 = vector.extract_strided_slice %5 {offsets = [0, 0, 0], sizes = [1, 8, 16], strides = [1, 1, 1]} : vector<4x8x16xbf16> to vector<1x8x16xbf16>
    %27 = vector.shape_cast %26 : vector<1x8x16xbf16> to vector<8x16xbf16>
    %cst_11 = arith.constant dense<0.000000e+00> : vector<8x64xf32>
    %28 = tpu.matmul %27, %2, %cst_11 {dimension_numbers = #tpu.dot_dimension_numbers<[1], [0], [0], [1], [0, 0, 1, 1], [], []>} : vector<8x16xbf16>, vector<16x64xbf16>, vector<8x64xf32> -> vector<8x64xf32>
    %29 = vector.broadcast %3 : vector<1x64xf32> to vector<8x64xf32>
    %30 = arith.addf %28, %29 : vector<8x64xf32>
    %31 = vector.extract_strided_slice %30 {offsets = [0, 0], sizes = [8, 32], strides = [1, 1]} : vector<8x64xf32> to vector<8x32xf32>
    %32 = vector.extract_strided_slice %30 {offsets = [0, 32], sizes = [8, 32], strides = [1, 1]} : vector<8x64xf32> to vector<8x32xf32>
    %33 = arith.truncf %31 : vector<8x32xf32> to vector<8x32xbf16>
    %cst_12 = arith.constant dense<0.000000e+00> : vector<8x32xf32>
    %34 = tpu.matmul %25, %33, %cst_12 {dimension_numbers = #tpu.dot_dimension_numbers<[1], [0], [0], [1], [0, 0, 1, 1], [], []>} : vector<8x8xbf16>, vector<8x32xbf16>, vector<8x32xf32> -> vector<8x32xf32>
    %cst_13 = arith.constant 1.000000e-01 : f32
    %35 = vector.broadcast %cst_13 : f32 to vector<8x32xf32>
    %36 = arith.mulf %35, %32 : vector<8x32xf32>
    %cst_14 = arith.constant 0.899999976 : f32
    %37 = vector.broadcast %cst_14 : f32 to vector<8x32xf32>
    %38 = arith.mulf %37, %34 : vector<8x32xf32>
    %39 = arith.addf %36, %38 : vector<8x32xf32>
    %cst_15 = arith.constant 0.000000e+00 : f32
    %40 = vector.broadcast %cst_15 : f32 to vector<8x32xf32>
    %41 = arith.cmpf oge, %39, %40 : vector<8x32xf32>
    %cst_16 = arith.constant 0.00999999977 : f32
    %42 = vector.broadcast %cst_16 : f32 to vector<8x32xf32>
    %43 = arith.mulf %42, %39 : vector<8x32xf32>
    %44 = arith.select %41, %39, %43 : vector<8x32xi1>, vector<8x32xf32>
    %c1_i32 = arith.constant 1 : i32
    %45 = arith.addi %0, %c1_i32 : i32
    %46 = arith.index_cast %45 : i32 to index
    %47 = memref.load %arg1[%46] : memref<8xf32, #tpu.memory_space<smem>>
    %c1 = arith.constant 1 : index
    %c0_17 = arith.constant 0 : index
    %c0_18 = arith.constant 0 : index
    %48 = vector.load %arg2[%c1, %c0_17, %c0_18] : memref<4x8x8xf32, #tpu.memory_space<vmem>>, vector<1x8x8xf32>
    %49 = vector.shape_cast %48 : vector<1x8x8xf32> to vector<8x8xf32>
    %50 = vector.broadcast %47 : f32 to vector<8x8xf32>
    %51 = arith.cmpf olt, %49, %50 : vector<8x8xf32>
    %cst_19 = arith.constant 0.000000e+00 : f32
    %52 = vector.broadcast %cst_19 : f32 to vector<8x8xf32>
    %53 = arith.select %51, %52, %49 : vector<8x8xi1>, vector<8x8xf32>
    %cst_20 = arith.constant dense<0xFF800000> : vector<8xf32>
    %54 = vector.multi_reduction <maximumf>, %53, %cst_20 [1] : vector<8x8xf32> to vector<8xf32>
    %55 = vector.shape_cast %54 : vector<8xf32> to vector<8x1xf32>
    %56 = vector.broadcast %55 : vector<8x1xf32> to vector<8x8xf32>
    %57 = arith.subf %53, %56 : vector<8x8xf32>
    %58 = math.exp %57 : vector<8x8xf32>
    %cst_21 = arith.constant dense<0.000000e+00> : vector<8xf32>
    %59 = vector.multi_reduction <add>, %58, %cst_21 [1] : vector<8x8xf32> to vector<8xf32>
    %60 = vector.shape_cast %59 : vector<8xf32> to vector<8x1xf32>
    %61 = tpu.reciprocal %60 {approx = true} : vector<8x1xf32> -> vector<8x1xf32>
    %62 = vector.broadcast %61 : vector<8x1xf32> to vector<8x8xf32>
    %63 = arith.mulf %58, %62 : vector<8x8xf32>
    %64 = arith.truncf %63 : vector<8x8xf32> to vector<8x8xbf16>
    %65 = vector.extract_strided_slice %5 {offsets = [1, 0, 0], sizes = [1, 8, 16], strides = [1, 1, 1]} : vector<4x8x16xbf16> to vector<1x8x16xbf16>
    %66 = vector.shape_cast %65 : vector<1x8x16xbf16> to vector<8x16xbf16>
    %cst_22 = arith.constant dense<0.000000e+00> : vector<8x64xf32>
    %67 = tpu.matmul %66, %2, %cst_22 {dimension_numbers = #tpu.dot_dimension_numbers<[1], [0], [0], [1], [0, 0, 1, 1], [], []>} : vector<8x16xbf16>, vector<16x64xbf16>, vector<8x64xf32> -> vector<8x64xf32>
    %68 = vector.broadcast %3 : vector<1x64xf32> to vector<8x64xf32>
    %69 = arith.addf %67, %68 : vector<8x64xf32>
    %70 = vector.extract_strided_slice %69 {offsets = [0, 0], sizes = [8, 32], strides = [1, 1]} : vector<8x64xf32> to vector<8x32xf32>
    %71 = vector.extract_strided_slice %69 {offsets = [0, 32], sizes = [8, 32], strides = [1, 1]} : vector<8x64xf32> to vector<8x32xf32>
    %72 = arith.truncf %70 : vector<8x32xf32> to vector<8x32xbf16>
    %cst_23 = arith.constant dense<0.000000e+00> : vector<8x32xf32>
    %73 = tpu.matmul %64, %72, %cst_23 {dimension_numbers = #tpu.dot_dimension_numbers<[1], [0], [0], [1], [0, 0, 1, 1], [], []>} : vector<8x8xbf16>, vector<8x32xbf16>, vector<8x32xf32> -> vector<8x32xf32>
    %cst_24 = arith.constant 1.000000e-01 : f32
    %74 = vector.broadcast %cst_24 : f32 to vector<8x32xf32>
    %75 = arith.mulf %74, %71 : vector<8x32xf32>
    %cst_25 = arith.constant 0.899999976 : f32
    %76 = vector.broadcast %cst_25 : f32 to vector<8x32xf32>
    %77 = arith.mulf %76, %73 : vector<8x32xf32>
    %78 = arith.addf %75, %77 : vector<8x32xf32>
    %cst_26 = arith.constant 0.000000e+00 : f32
    %79 = vector.broadcast %cst_26 : f32 to vector<8x32xf32>
    %80 = arith.cmpf oge, %78, %79 : vector<8x32xf32>
    %cst_27 = arith.constant 0.00999999977 : f32
    %81 = vector.broadcast %cst_27 : f32 to vector<8x32xf32>
    %82 = arith.mulf %81, %78 : vector<8x32xf32>
    %83 = arith.select %80, %78, %82 : vector<8x32xi1>, vector<8x32xf32>
    %c2_i32 = arith.constant 2 : i32
    %84 = arith.addi %0, %c2_i32 : i32
    %85 = arith.index_cast %84 : i32 to index
    %86 = memref.load %arg1[%85] : memref<8xf32, #tpu.memory_space<smem>>
    %c2 = arith.constant 2 : index
    %c0_28 = arith.constant 0 : index
    %c0_29 = arith.constant 0 : index
    %87 = vector.load %arg2[%c2, %c0_28, %c0_29] : memref<4x8x8xf32, #tpu.memory_space<vmem>>, vector<1x8x8xf32>
    %88 = vector.shape_cast %87 : vector<1x8x8xf32> to vector<8x8xf32>
    %89 = vector.broadcast %86 : f32 to vector<8x8xf32>
    %90 = arith.cmpf olt, %88, %89 : vector<8x8xf32>
    %cst_30 = arith.constant 0.000000e+00 : f32
    %91 = vector.broadcast %cst_30 : f32 to vector<8x8xf32>
    %92 = arith.select %90, %91, %88 : vector<8x8xi1>, vector<8x8xf32>
    %cst_31 = arith.constant dense<0xFF800000> : vector<8xf32>
    %93 = vector.multi_reduction <maximumf>, %92, %cst_31 [1] : vector<8x8xf32> to vector<8xf32>
    %94 = vector.shape_cast %93 : vector<8xf32> to vector<8x1xf32>
    %95 = vector.broadcast %94 : vector<8x1xf32> to vector<8x8xf32>
    %96 = arith.subf %92, %95 : vector<8x8xf32>
    %97 = math.exp %96 : vector<8x8xf32>
    %cst_32 = arith.constant dense<0.000000e+00> : vector<8xf32>
    %98 = vector.multi_reduction <add>, %97, %cst_32 [1] : vector<8x8xf32> to vector<8xf32>
    %99 = vector.shape_cast %98 : vector<8xf32> to vector<8x1xf32>
    %100 = tpu.reciprocal %99 {approx = true} : vector<8x1xf32> -> vector<8x1xf32>
    %101 = vector.broadcast %100 : vector<8x1xf32> to vector<8x8xf32>
    %102 = arith.mulf %97, %101 : vector<8x8xf32>
    %103 = arith.truncf %102 : vector<8x8xf32> to vector<8x8xbf16>
    %104 = vector.extract_strided_slice %5 {offsets = [2, 0, 0], sizes = [1, 8, 16], strides = [1, 1, 1]} : vector<4x8x16xbf16> to vector<1x8x16xbf16>
    %105 = vector.shape_cast %104 : vector<1x8x16xbf16> to vector<8x16xbf16>
    %cst_33 = arith.constant dense<0.000000e+00> : vector<8x64xf32>
    %106 = tpu.matmul %105, %2, %cst_33 {dimension_numbers = #tpu.dot_dimension_numbers<[1], [0], [0], [1], [0, 0, 1, 1], [], []>} : vector<8x16xbf16>, vector<16x64xbf16>, vector<8x64xf32> -> vector<8x64xf32>
    %107 = vector.broadcast %3 : vector<1x64xf32> to vector<8x64xf32>
    %108 = arith.addf %106, %107 : vector<8x64xf32>
    %109 = vector.extract_strided_slice %108 {offsets = [0, 0], sizes = [8, 32], strides = [1, 1]} : vector<8x64xf32> to vector<8x32xf32>
    %110 = vector.extract_strided_slice %108 {offsets = [0, 32], sizes = [8, 32], strides = [1, 1]} : vector<8x64xf32> to vector<8x32xf32>
    %111 = arith.truncf %109 : vector<8x32xf32> to vector<8x32xbf16>
    %cst_34 = arith.constant dense<0.000000e+00> : vector<8x32xf32>
    %112 = tpu.matmul %103, %111, %cst_34 {dimension_numbers = #tpu.dot_dimension_numbers<[1], [0], [0], [1], [0, 0, 1, 1], [], []>} : vector<8x8xbf16>, vector<8x32xbf16>, vector<8x32xf32> -> vector<8x32xf32>
    %cst_35 = arith.constant 1.000000e-01 : f32
    %113 = vector.broadcast %cst_35 : f32 to vector<8x32xf32>
    %114 = arith.mulf %113, %110 : vector<8x32xf32>
    %cst_36 = arith.constant 0.899999976 : f32
    %115 = vector.broadcast %cst_36 : f32 to vector<8x32xf32>
    %116 = arith.mulf %115, %112 : vector<8x32xf32>
    %117 = arith.addf %114, %116 : vector<8x32xf32>
    %cst_37 = arith.constant 0.000000e+00 : f32
    %118 = vector.broadcast %cst_37 : f32 to vector<8x32xf32>
    %119 = arith.cmpf oge, %117, %118 : vector<8x32xf32>
    %cst_38 = arith.constant 0.00999999977 : f32
    %120 = vector.broadcast %cst_38 : f32 to vector<8x32xf32>
    %121 = arith.mulf %120, %117 : vector<8x32xf32>
    %122 = arith.select %119, %117, %121 : vector<8x32xi1>, vector<8x32xf32>
    %c3_i32 = arith.constant 3 : i32
    %123 = arith.addi %0, %c3_i32 : i32
    %124 = arith.index_cast %123 : i32 to index
    %125 = memref.load %arg1[%124] : memref<8xf32, #tpu.memory_space<smem>>
    %c3 = arith.constant 3 : index
    %c0_39 = arith.constant 0 : index
    %c0_40 = arith.constant 0 : index
    %126 = vector.load %arg2[%c3, %c0_39, %c0_40] : memref<4x8x8xf32, #tpu.memory_space<vmem>>, vector<1x8x8xf32>
    %127 = vector.shape_cast %126 : vector<1x8x8xf32> to vector<8x8xf32>
    %128 = vector.broadcast %125 : f32 to vector<8x8xf32>
    %129 = arith.cmpf olt, %127, %128 : vector<8x8xf32>
    %cst_41 = arith.constant 0.000000e+00 : f32
    %130 = vector.broadcast %cst_41 : f32 to vector<8x8xf32>
    %131 = arith.select %129, %130, %127 : vector<8x8xi1>, vector<8x8xf32>
    %cst_42 = arith.constant dense<0xFF800000> : vector<8xf32>
    %132 = vector.multi_reduction <maximumf>, %131, %cst_42 [1] : vector<8x8xf32> to vector<8xf32>
    %133 = vector.shape_cast %132 : vector<8xf32> to vector<8x1xf32>
    %134 = vector.broadcast %133 : vector<8x1xf32> to vector<8x8xf32>
    %135 = arith.subf %131, %134 : vector<8x8xf32>
    %136 = math.exp %135 : vector<8x8xf32>
    %cst_43 = arith.constant dense<0.000000e+00> : vector<8xf32>
    %137 = vector.multi_reduction <add>, %136, %cst_43 [1] : vector<8x8xf32> to vector<8xf32>
    %138 = vector.shape_cast %137 : vector<8xf32> to vector<8x1xf32>
    %139 = tpu.reciprocal %138 {approx = true} : vector<8x1xf32> -> vector<8x1xf32>
    %140 = vector.broadcast %139 : vector<8x1xf32> to vector<8x8xf32>
    %141 = arith.mulf %136, %140 : vector<8x8xf32>
    %142 = arith.truncf %141 : vector<8x8xf32> to vector<8x8xbf16>
    %143 = vector.extract_strided_slice %5 {offsets = [3, 0, 0], sizes = [1, 8, 16], strides = [1, 1, 1]} : vector<4x8x16xbf16> to vector<1x8x16xbf16>
    %144 = vector.shape_cast %143 : vector<1x8x16xbf16> to vector<8x16xbf16>
    %cst_44 = arith.constant dense<0.000000e+00> : vector<8x64xf32>
    %145 = tpu.matmul %144, %2, %cst_44 {dimension_numbers = #tpu.dot_dimension_numbers<[1], [0], [0], [1], [0, 0, 1, 1], [], []>} : vector<8x16xbf16>, vector<16x64xbf16>, vector<8x64xf32> -> vector<8x64xf32>
    %146 = vector.broadcast %3 : vector<1x64xf32> to vector<8x64xf32>
    %147 = arith.addf %145, %146 : vector<8x64xf32>
    %148 = vector.extract_strided_slice %147 {offsets = [0, 0], sizes = [8, 32], strides = [1, 1]} : vector<8x64xf32> to vector<8x32xf32>
    %149 = vector.extract_strided_slice %147 {offsets = [0, 32], sizes = [8, 32], strides = [1, 1]} : vector<8x64xf32> to vector<8x32xf32>
    %150 = arith.truncf %148 : vector<8x32xf32> to vector<8x32xbf16>
    %cst_45 = arith.constant dense<0.000000e+00> : vector<8x32xf32>
    %151 = tpu.matmul %142, %150, %cst_45 {dimension_numbers = #tpu.dot_dimension_numbers<[1], [0], [0], [1], [0, 0, 1, 1], [], []>} : vector<8x8xbf16>, vector<8x32xbf16>, vector<8x32xf32> -> vector<8x32xf32>
    %cst_46 = arith.constant 1.000000e-01 : f32
    %152 = vector.broadcast %cst_46 : f32 to vector<8x32xf32>
    %153 = arith.mulf %152, %149 : vector<8x32xf32>
    %cst_47 = arith.constant 0.899999976 : f32
    %154 = vector.broadcast %cst_47 : f32 to vector<8x32xf32>
    %155 = arith.mulf %154, %151 : vector<8x32xf32>
    %156 = arith.addf %153, %155 : vector<8x32xf32>
    %cst_48 = arith.constant 0.000000e+00 : f32
    %157 = vector.broadcast %cst_48 : f32 to vector<8x32xf32>
    %158 = arith.cmpf oge, %156, %157 : vector<8x32xf32>
    %cst_49 = arith.constant 0.00999999977 : f32
    %159 = vector.broadcast %cst_49 : f32 to vector<8x32xf32>
    %160 = arith.mulf %159, %156 : vector<8x32xf32>
    %161 = arith.select %158, %156, %160 : vector<8x32xi1>, vector<8x32xf32>
    %162 = tpu.concatenate %44, %83, %122, %161 in 1 : vector<8x32xf32>, vector<8x32xf32>, vector<8x32xf32>, vector<8x32xf32> -> vector<8x128xf32>
    %c0_50 = arith.constant 0 : index
    %c0_51 = arith.constant 0 : index
    %163 = vector.load %arg6[%c0_50, %c0_51] : memref<8x128xf32, #tpu.memory_space<vmem>>, vector<8x128xf32>
    tpu.vector_store %arg6[%c0_50, %c0_51], %162 {strides = array<i32>} : memref<8x128xf32, #tpu.memory_space<vmem>>, vector<8x128xf32>,
    return
  }
  func.func @transform_0(%arg0: i32, %arg1: memref<8xf32, #tpu.memory_space<smem>>) -> (i32, i32, i32) {
    %c0_i32 = arith.constant 0 : i32
    %c0_i32_0 = arith.constant 0 : i32
    %c0_i32_1 = arith.constant 0 : i32
    return %arg0, %c0_i32, %c0_i32_0 : i32, i32, i32
  }
  func.func @transform_1(%arg0: i32, %arg1: memref<8xf32, #tpu.memory_space<smem>>) -> (i32, i32, i32) {
    %c0_i32 = arith.constant 0 : i32
    %c0_i32_0 = arith.constant 0 : i32
    %c0_i32_1 = arith.constant 0 : i32
    return %arg0, %c0_i32, %c0_i32_0 : i32, i32, i32
  }
  func.func @transform_2(%arg0: i32, %arg1: memref<8xf32, #tpu.memory_space<smem>>) -> (i32, i32) {
    %c0_i32 = arith.constant 0 : i32
    %c0_i32_0 = arith.constant 0 : i32
    %c0_i32_1 = arith.constant 0 : i32
    return %c0_i32, %c0_i32_0 : i32, i32
  }
  func.func @transform_3(%arg0: i32, %arg1: memref<8xf32, #tpu.memory_space<smem>>) -> (i32, i32) {
    %c0_i32 = arith.constant 0 : i32
    %c0_i32_0 = arith.constant 0 : i32
    %c0_i32_1 = arith.constant 0 : i32
    return %c0_i32, %c0_i32_0 : i32, i32
  }
  func.func @transform_4(%arg0: i32, %arg1: memref<8xf32, #tpu.memory_space<smem>>) -> (i32, i32) {
    %c0_i32 = arith.constant 0 : i32
    %c0_i32_0 = arith.constant 0 : i32
    return %c0_i32, %arg0 : i32, i32
  }
}

</mosaic_0001>

<bundles_post_ra>
// kernel: gcn1_forward_batched.1
= control target key start
LH: loop header
LB: loop body
LE: loop exit
PB: predicated region body
PF: predicated region fallthrough
CT: control target
= control target key end

     0   :  { %s1105_s0 = inlined_call_operand.vmem [shape: f32[8], index: 0, kind: input, shape index: {}]   ;;  %s1106_s1 = inlined_call_operand.vmem [shape: f32[8,8,8], index: 1, kind: input, shape index: {}]   ;;  %s1107_s2 = inlined_call_operand.vmem [shape: f32[8,8,16], index: 2, kind: input, shape index: {}]   ;;  %s1108_s3 = inlined_call_operand.vmem [shape: f32[16,64], index: 3, kind: input, shape index: {}]   ;;  %s1109_s4 = inlined_call_operand.vmem [shape: f32[1,64], index: 4, kind: input, shape index: {}]   ;;  %s1110_s5 = inlined_call_operand.vmem [shape: f32[8,256], index: 5, kind: output, shape index: {}]  }
   0x1   :  { %s10_s20 = sshll.u32 %s1105_s0, 4  ;;  %s11_s20 = int_to_ptr.vmem [resolvable:$true] %s10_s20 }
   0x2   :  { %s927_s21 = scalar_lea.vmem %s11_s20, 16  ;;  %p932_p1 = scmp.lt.s32.totalorder %s11_s20, %s11_s20 }
   0x3   :  { %p928_p0 = scmp.ne.s32.totalorder %s11_s20, %s927_s21  ;;  %p933_p2 = scmp.lt.s32.totalorder %s927_s21, %s927_s21 }
   0x5   :  { %p934_p3 = por %p933_p2, %p932_p1 }
   0x7   :  { %p935_p4 = pnand %p934_p3, %p928_p0 }
   0x9   :  { %938 = shalt.err (!%p935_p4)  }
   0xa   :  { %s949_s22 = smov [#allocation3]  }
   0xb   :  { %13 = dma.vmem_to_smem %s11_s20, 16, %s949_s22, [#allocation2] }
   0xc   :  { %943 = dma.done.wait [#allocation2], 16 }
   0xd   :  { %944 = vsyncadd [#allocation2], 4294967280 }
   0xe   :  { %15 = sfence }
   0xf   :  { %s988_s23 = smov 0  }
  0x10 LB: > { %s994_s0 = sadd.s32 4294967295, %s947_s23   ;;  %p812_p5 = scmp.ge.s32.totalorder %s947_s23, 1  ;;  %s947_s23 = sphi %s988_s23, %s21_s23  }
  0x11   : > { %p181_p6 = scmp.lt.s32.totalorder %s947_s23, 3 }
  0x13   : > { %p182_p7 = pnand %p812_p5, %p181_p6 }
  0x14   : > { %s813_s24 = sshll.u32 (!%p182_p7), %s994_s0, 2  ;;  %v229_v0 = vld [vmem:[%s1108_s3] sm:$0xff] (!%p182_p7)  ;;  %v230_v1 = vld [vmem:[%s1108_s3 + $0x8] sm:$0xff] (!%p182_p7)  ;;  %v950_v2 = vmov (!%p182_p7), 0.0   ;;  %vm951_vm0 = vmmov (!%p182_p7), 0   ;;  %vm246_vm1 = vcmask (!%p182_p7), 64512  }
  0x15   : > { %185 = sbr.rel (%p182_p7) target bundleno = 826 (0x33a), region = 36  ;;  %p212_p8 = scmp.lt.s32.totalorder (!%p182_p7), %s813_s24, 7  ;;  %849 = vmatprep.subr.bf16.mxu0 (!%p182_p7), %v950_v2  ;;  %v231_v3 = vpack.c.bf16 (!%p182_p7), %v230_v1, %v229_v0  ;;  %851 = vmatprep.mubr.msk.bf16.mxu0 (!%p182_p7), %vm951_vm0, %v950_v2  ;;  %vm265_vm3 = vcmask (!%p182_p7), 130048   ;;  %v819_v48 = vld [vmem:[%s1109_s4] ss:$0 sm:$0xff] (!%p182_p7)  ;;  %vm313_vm7 = vcmask (!%p182_p7), 1043456  }
  0x16   : > { %s241_s29 = sld [smem:[#allocation3 + %s813_s24]] (!%p182_p7)  ;;  %s486_s30 = sadd.s32 (!%p182_p7), 2, %s813_s24  ;;  %855 = vmatprep.subr.bf16.mxu1 (!%p182_p7), %v950_v2  ;;  %857 = vmatprep.mubr.msk.bf16.mxu1 (!%p182_p7), %vm951_vm0, %v950_v2  ;;  %vm736_vm12 = vcmask (!%p182_p7), 261120   ;;  %vm738_vm13 = vcmask (!%p182_p7), 523264   ;;  %vm740_vm14 = vcmask (!%p182_p7), 785408  }
  0x17   : > { %s367_s6 = sadd.s32 (!%p182_p7), 1, %s813_s24  ;;  %850 = vmatpush3.bf16.msra.mxu0 (!%p182_p7), %v231_v3  ;;  %s487_s8 = sld [smem:[#allocation3 + %s486_s30]] (!%p182_p7) }
  0x18   : > { %s368_s9 = sld [smem:[#allocation3 + %s367_s6]] (!%p182_p7)  ;;  %861 = vmatprep.subr.bf16.mxu0 (!%p182_p7), %v950_v2  ;;  %s605_s11 = sadd.s32 (!%p182_p7), 3, %s813_s24 }
  0x19   : > { %s606_s18 = sld [smem:[#allocation3 + %s605_s11]] (!%p182_p7)  ;;  %s952_s21 = smov (!%p182_p7), 32  }
  0x1a   : > { %s953_s22 = smov (!%p182_p7), 96   ;;  %p223_p9 = scmp.lt.s32.totalorder (!%p182_p7), %s994_s0, 1 }
  0x1c   : > { %s213_s7 = scalar_select %p212_p8, %s813_s24, 7  ;;  %v243_v4 = vstv %s241_s29 }
  0x1d   : > { %v490_v10 = vstv %s487_s8  ;;  %s954_s24 = smov 64   ;;  %s1112_s0 = smov (!%p223_p9, %s994_s0), 1 }
  0x1e   : > { %s814_s10 = sshll.u32 %s213_s7, 3  ;;  %v371_v11 = vstv %s368_s9  ;;  %s817_s25 = sshll.u32 %s1112_s0, 3 }
  0x1f   : > { %s215_s14 = scalar_lea.vmem %s1106_s1, %s814_s10  ;;  %s1018_s17 = scalar_lea.vmem %s1107_s2, %s814_s10  ;;  %v609_v20 = vstv %s606_s18 }
  0x20   : > { %v242_v5 = vld [vmem:[%s215_s14] sm:$0xff]  ;;  %v825_v6 = vld [vmem:[%s215_s14 + $0x10] sm:$0xff]  ;;  %v822_v7 = vld [vmem:[%s215_s14 + $0x8] sm:$0xff]  ;;  %s226_s28 = scalar_lea.vmem %s1110_s5, %s817_s25 }
  0x21   : > { %vm244_vm2 = vcmp.lt.f32.partialorder %v242_v5, %v243_v4  ;;  %v233_v8 = vld [vmem:[%s1018_s17] sm:$0xff]  ;;  %vm491_vm4 = vcmp.lt.f32.partialorder %v825_v6, %v490_v10  ;;  %vm372_vm5 = vcmp.lt.f32.partialorder %v822_v7, %v371_v11  ;;  %v828_v14 = vld [vmem:[%s215_s14 + $0x18] sm:$0xff]  ;;  %v234_v17 = vld [vmem:[%s1018_s17 + $0x8] sm:$0xff] }
  0x22   : > { %v245_v9 = vsel %vm244_vm2, 0.0, %v242_v5  ;;  %v237_v12 = vpack.c.bf16 %v233_v8, %v233_v8  ;;  %v492_v15 = vsel %vm491_vm4, 0.0, %v825_v6  ;;  %v373_v16 = vsel %vm372_vm5, 0.0, %v822_v7  ;;  %v235_v24 = vld [vmem:[%s1018_s17 + $0x10] sm:$0xff]  ;;  %v236_v26 = vld [vmem:[%s1018_s17 + $0x18] sm:$0xff] }
  0x23   : > { %v247_v13 = vsel %vm246_vm1, %v245_v9, -inf  ;;  %v493_v18 = vsel %vm246_vm1, %v492_v15, -inf  ;;  %v374_v19 = vsel %vm246_vm1, %v373_v16, -inf  ;;  %vm610_vm6 = vcmp.lt.f32.partialorder %v828_v14, %v609_v20 }
  0x24   : > { %248 = vmax.xlane.f32.xlu0 %v247_v13  ;;  %852 = vmatmul.mubr.msk.bf16.vlgmr.msra.gmra.mrb[0].mxu0 %vm265_vm3, %v237_v12  ;;  %v611_v21 = vsel %vm610_vm6, 0.0, %v828_v14  ;;  %v238_v23 = vpack.c.bf16 %v234_v17, %v234_v17  ;;  %v239_v25 = vpack.c.bf16 %v235_v24, %v235_v24  ;;  %v240_v27 = vpack.c.bf16 %v236_v26, %v236_v26 }
  0x25   : > { %862 = vmatpush3.bf16.msra.mxu0 %v231_v3  ;;  %863 = vmatprep.mubr.msk.bf16.mxu0 %vm951_vm0, %v950_v2  ;;  %v612_v22 = vsel %vm246_vm1, %v611_v21, -inf }
  0x26   : > { %494 = vmax.xlane.f32.xlu1 %v493_v18  ;;  %873 = vmatprep.subr.bf16.mxu0 %v950_v2 }
  0x28   : > { %375 = vmax.xlane.f32.xlu0 %v374_v19 }
  0x2a   : > { %613 = vmax.xlane.f32.xlu1 %v612_v22 }
  0x2c   : > { %864 = vmatmul.mubr.msk.bf16.vlgmr.msra.gmra.mrb[4].mxu0 %vm265_vm3, %v238_v23 }
  0x2d   : > { %874 = vmatpush3.bf16.msra.mxu0 %v231_v3  ;;  %875 = vmatprep.mubr.msk.bf16.mxu0 %vm951_vm0, %v950_v2 }
  0x2e   : > { %885 = vmatprep.subr.bf16.mxu0 %v950_v2 }
  0x34   : > { %876 = vmatmul.mubr.msk.bf16.vlgmr.msra.gmra.mrb[8].mxu0 %vm265_vm3, %v239_v25 }
  0x35   : > { %886 = vmatpush3.bf16.msra.mxu0 %v231_v3  ;;  %887 = vmatprep.mubr.msk.bf16.mxu0 %vm951_vm0, %v950_v2 }
  0x3c   : > { %888 = vmatmul.mubr.msk.bf16.vlgmr.msra.gmra.mrb[12].mxu0 %vm265_vm3, %v240_v27 }
  0xb1   : > { %v249_v28 = vpop.xlane.xlu0 %248 }
  0xb2   : > { %v250_v29 = vsub.f32 %v245_v9, %v249_v28 }
  0xb3   : > { %v495_v30 = vpop.xlane.xlu1 %494 }
  0xb4   : > { %v251_v31 = vmul.f32 1.442695, %v250_v29  ;;  %v496_v32 = vsub.f32 %v492_v15, %v495_v30 }
  0xb5   : > { %v376_v33 = vpop.xlane.xlu0 %375 }
  0xb6   : > { %911 = vpow2.f32 %v251_v31  ;;  %v497_v34 = vmul.f32 1.442695, %v496_v32  ;;  %v377_v35 = vsub.f32 %v373_v16, %v376_v33 }
  0xb7   : > { %v614_v36 = vpop.xlane.xlu1 %613 }
  0xb8   : > { %913 = vpow2.f32 %v497_v34  ;;  %v378_v37 = vmul.f32 1.442695, %v377_v35  ;;  %v615_v38 = vsub.f32 %v611_v21, %v614_v36 }
  0xba   : > { %915 = vpow2.f32 %v378_v37  ;;  %v616_v39 = vmul.f32 1.442695, %v615_v38 }
  0xbc   : > { %917 = vpow2.f32 %v616_v39 }
  0xc0   : > { %v912_v40 = vpop.eup %911 }
  0xc1   : > { %v253_v41 = vsel %vm246_vm1, %v912_v40, 0.0 }
  0xc2   : > { %v1041_v42 = vpop.eup %913  ;;  %254 = vadd.xlane.f32.xlu0 %v253_v41 }
  0xc3   : > { %v499_v43 = vsel %vm246_vm1, %v1041_v42, 0.0 }
  0xc4   : > { %v916_v44 = vpop.eup %915 }
  0xc5   : > { %v380_v45 = vsel %vm246_vm1, %v916_v44, 0.0 }
  0xc6   : > { %v1046_v46 = vpop.eup %917  ;;  %500 = vadd.xlane.f32.xlu0 %v499_v43  ;;  %381 = vadd.xlane.f32.xlu1 %v380_v45 }
  0xc7   : > { %v618_v47 = vsel %vm246_vm1, %v1046_v46, 0.0 }
  0xca   : > { %619 = vadd.xlane.f32.xlu1 %v618_v47 }
  0xf7   : > { %v303_v49 = vpop.f32.mrb[0].mxu0 }
  0xf8   : > { %v1053_v50 = vadd.f32 %v819_v48, %v303_v49  ;;  %v853_v51 = vpop.f32.mrb[1].mxu0 }
  0xf9   : > { %v306_v52 = vpop.f32.mrb[2].mxu0 }
  0xfa   : > { %v854_v53 = vpop.f32.mrb[3].mxu0  ;;  %v309_v54 = vpack.c.bf16 %v1053_v50, %v1053_v50  ;;  %v357_v49 = vmul.f32 0.1, %v1053_v50 }
  0xfc   : > { %v315_v55 = vsel %vm313_vm7, %v309_v54, 0 }
  0xfd   : > { %856 = vmatpush3.bf16.msra.mxu1 %v315_v55 }
  0xfe   : > { %867 = vmatprep.subr.bf16.mxu1 %v950_v2 }
  0xff   : > { %v423_v56 = vpop.f32.mrb[4].mxu0 }
 0x100   : > { %v1059_v57 = vadd.f32 %v819_v48, %v423_v56  ;;  %v865_v58 = vpop.f32.mrb[5].mxu0 }
 0x101   : > { %v426_v59 = vpop.f32.mrb[6].mxu0 }
 0x102   : > { %v429_v60 = vpack.c.bf16 %v1059_v57, %v1059_v57  ;;  %v866_v61 = vpop.f32.mrb[7].mxu0 }
 0x104   : > { %v434_v62 = vsel %vm313_vm7, %v429_v60, 0 }
 0x107   : > { %v542_v63 = vpop.f32.mrb[8].mxu0 }
 0x108   : > { %v1064_v0 = vadd.f32 %v819_v48, %v542_v63  ;;  %v877_v1 = vpop.f32.mrb[9].mxu0 }
 0x109   : > { %v545_v3 = vpop.f32.mrb[10].mxu0 }
 0x10a   : > { %v548_v4 = vpack.c.bf16 %v1064_v0, %v1064_v0  ;;  %v878_v5 = vpop.f32.mrb[11].mxu0  ;;  %v595_v55 = vmul.f32 0.1, %v1064_v0  ;;  %v476_v0 = vmul.f32 0.1, %v1059_v57 }
 0x10c   : > { %v553_v6 = vsel %vm313_vm7, %v548_v4, 0 }
 0x10f   : > { %v661_v7 = vpop.f32.mrb[12].mxu0 }
 0x110   : > { %v1069_v8 = vadd.f32 %v819_v48, %v661_v7  ;;  %v889_v9 = vpop.f32.mrb[13].mxu0 }
 0x111   : > { %v664_v10 = vpop.f32.mrb[14].mxu0 }
 0x112   : > { %v667_v11 = vpack.c.bf16 %v1069_v8, %v1069_v8  ;;  %v890_v12 = vpop.f32.mrb[15].mxu0  ;;  %v714_v50 = vmul.f32 0.1, %v1069_v8 }
 0x114   : > { %v672_v13 = vsel %vm313_vm7, %v667_v11, 0 }
 0x14f   : > { %v255_v14 = vpop.xlane.xlu0 %254 }
 0x150   : > { %919 = vrcp.f32 %v255_v14 }
 0x153   : > { %v382_v15 = vpop.xlane.xlu1 %381  ;;  %v501_v16 = vpop.xlane.xlu0 %500 }
 0x154   : > { %921 = vrcp.f32 %v382_v15 }
 0x155   : > { %923 = vrcp.f32 %v501_v16 }
 0x157   : > { %v620_v22 = vpop.xlane.xlu1 %619 }
 0x158   : > { %925 = vrcp.f32 %v620_v22 }
 0x15a   : > { %v920_v17 = vpop.eup %919 }
 0x15b   : > { %v257_v18 = vmul.f32 %v920_v17, %v912_v40 }
 0x15d   : > { %v258_v19 = vpack.c.bf16 %v257_v18, %v257_v18 }
 0x15e   : > { %v922_v20 = vpop.eup %921 }
 0x15f   : > { %858 = vmatmul.mubr.msk.bf16.vlgmr.msra.gmra.mrb[0].mxu1 %vm246_vm1, %v258_v19  ;;  %v384_v21 = vmul.f32 %v922_v20, %v916_v44  ;;  %v924_v24 = vpop.eup %923 }
 0x160   : > { %868 = vmatpush3.bf16.msra.mxu1 %v434_v62  ;;  %869 = vmatprep.mubr.msk.bf16.mxu1 %vm951_vm0, %v950_v2  ;;  %v503_v25 = vmul.f32 %v924_v24, %v1041_v42 }
 0x161   : > { %879 = vmatprep.subr.bf16.mxu1 %v950_v2  ;;  %v385_v23 = vpack.c.bf16 %v384_v21, %v384_v21 }
 0x162   : > { %v504_v26 = vpack.c.bf16 %v503_v25, %v503_v25  ;;  %v926_v27 = vpop.eup %925 }
 0x163   : > { %v622_v28 = vmul.f32 %v926_v27, %v1046_v46 }
 0x165   : > { %v623_v29 = vpack.c.bf16 %v622_v28, %v622_v28 }
 0x167   : > { %870 = vmatmul.mubr.msk.bf16.vlgmr.msra.gmra.mrb[4].mxu1 %vm246_vm1, %v385_v23 }
 0x168   : > { %880 = vmatpush3.bf16.msra.mxu1 %v553_v6  ;;  %881 = vmatprep.mubr.msk.bf16.mxu1 %vm951_vm0, %v950_v2 }
 0x169   : > { %891 = vmatprep.subr.bf16.mxu1 %v950_v2 }
 0x16f   : > { %882 = vmatmul.mubr.msk.bf16.vlgmr.msra.gmra.mrb[8].mxu1 %vm246_vm1, %v504_v26 }
 0x170   : > { %892 = vmatpush3.bf16.msra.mxu1 %v672_v13  ;;  %893 = vmatprep.mubr.msk.bf16.mxu1 %vm951_vm0, %v950_v2 }
 0x177   : > { %894 = vmatmul.mubr.msk.bf16.vlgmr.msra.gmra.mrb[12].mxu1 %vm246_vm1, %v623_v29 }
 0x232   : > { %v351_v30 = vpop.f32.mrb[0].mxu1 }
 0x233   : > { %v358_v31 = vmul.f32 0.9, %v351_v30  ;;  %v859_v32 = vpop.f32.mrb[1].mxu1 }
 0x234   : > { %v354_v33 = vpop.f32.mrb[2].mxu1 }
 0x235   : > { %360 = vrot.lane.b32.xlu0 %v358_v31, %s952_s21  ;;  %v860_v34 = vpop.f32.mrb[3].mxu1 }
 0x23a   : > { %v470_v35 = vpop.f32.mrb[4].mxu1 }
 0x23b   : > { %v871_v36 = vpop.f32.mrb[5].mxu1  ;;  %v477_v48 = vmul.f32 0.9, %v470_v35 }
 0x23c   : > { %v473_v37 = vpop.f32.mrb[6].mxu1 }
 0x23d   : > { %v872_v38 = vpop.f32.mrb[7].mxu1 }
 0x242   : > { %v589_v39 = vpop.f32.mrb[8].mxu1 }
 0x243   : > { %v596_v40 = vmul.f32 0.9, %v589_v39  ;;  %v883_v2 = vpop.f32.mrb[9].mxu1 }
 0x244   : > { %v592_v41 = vpop.f32.mrb[10].mxu1 }
 0x245   : > { %598 = vrot.lane.b32.xlu1 %v596_v40, %s952_s21  ;;  %v884_v42 = vpop.f32.mrb[11].mxu1 }
 0x24a   : > { %v708_v43 = vpop.f32.mrb[12].mxu1 }
 0x24b   : > { %v715_v44 = vmul.f32 0.9, %v708_v43  ;;  %v895_v45 = vpop.f32.mrb[13].mxu1 }
 0x24c   : > { %v711_v46 = vpop.f32.mrb[14].mxu1 }
 0x24d   : > { %717 = vrot.lane.b32.xlu1 %v715_v44, %s952_s21  ;;  %v896_v47 = vpop.f32.mrb[15].mxu1 }
 0x251   : > { %479 = vrot.lane.b32.xlu1 %v477_v48, %s952_s21 }
 0x2a7   : > { %v361_v51 = vpop.permute.xlu0 %360 }
 0x2a8   : > { %v363_v52 = vadd.f32 %v361_v51, %v357_v49 }
 0x2aa   : > { %v365_v53 = vmul.f32 0.01, %v363_v52  ;;  %vm364_vm8 = vcmp.ge.f32.partialorder %v363_v52, 0.0 }
 0x2ac   : > { %v366_v54 = vsel %vm364_vm8, %v363_v52, %v365_v53 }
 0x2ad   : > { %725 = vrot.lane.b32.xlu0 %v366_v54, %s953_s22 }
 0x2b7   : > { %v599_v56 = vpop.permute.xlu1 %598 }
 0x2b8   : > { %v601_v58 = vadd.f32 %v599_v56, %v595_v55 }
 0x2ba   : > { %v603_v59 = vmul.f32 0.01, %v601_v58  ;;  %vm602_vm9 = vcmp.ge.f32.partialorder %v601_v58, 0.0 }
 0x2bc   : > { %v604_v60 = vsel %vm602_vm9, %v601_v58, %v603_v59 }
 0x2bd   : > { %729 = vrot.lane.b32.xlu1 %v604_v60, %s952_s21 }
 0x2bf   : > { %v718_v61 = vpop.permute.xlu1 %717 }
 0x2c0   : > { %v720_v62 = vadd.f32 %v718_v61, %v714_v50 }
 0x2c2   : > { %v722_v63 = vmul.f32 0.01, %v720_v62  ;;  %vm721_vm10 = vcmp.ge.f32.partialorder %v720_v62, 0.0 }
 0x2c3   : > { %v480_v3 = vpop.permute.xlu1 %479 }
 0x2c4   : > { %v723_v1 = vsel %vm721_vm10, %v720_v62, %v722_v63  ;;  %v482_v4 = vadd.f32 %v480_v3, %v476_v0 }
 0x2c5   : > { %733 = vrot.lane.b32.xlu0 %v723_v1, %s954_s24 }
 0x2c6   : > { %v484_v5 = vmul.f32 0.01, %v482_v4  ;;  %vm483_vm11 = vcmp.ge.f32.partialorder %v482_v4, 0.0 }
 0x2c8   : > { %v485_v8 = vsel %vm483_vm11, %v482_v4, %v484_v5 }
 0x31f   : > { %v726_v6 = vpop.permute.xlu0 %725 }
 0x320   : > { %v737_v9 = vsel %vm736_vm12, %v726_v6, %v485_v8 }
 0x32f   : > { %v730_v7 = vpop.permute.xlu1 %729 }
 0x330   : > { %v739_v10 = vsel %vm738_vm13, %v737_v9, %v730_v7 }
 0x337   : > { %v734_v11 = vpop.permute.xlu0 %733 }
 0x338   : > { %v741_v57 = vsel %vm740_vm14, %v739_v10, %v734_v11 }
 0x339   : > { %742 = vst [vmem:[%s226_s28] sm:$0xff] %v741_v57 }
 0x33a PF: > { %s21_s23 = sadd.s32 1, %s947_s23  }
 0x33b   : > { %p18_p10 = scmp.ge.s32.totalorder %s21_s23, 4  }
 0x33d   :  { %20 = sbr.rel (!%p18_p10) target bundleno = 16 (0x10), region = 72 }

</bundles_post_ra>
